<compile_context>
chip_gen: v6e
topology: v6e:2x2x1
jax: 0.10.0
libtpu: 0.0.40
codegen_flags: <defaults>
</compile_context>

<pallas_src>
import functools

import jax
import jax.numpy as jnp
from jax.experimental import pallas as pl
from jax.experimental.pallas import tpu as pltpu

EPS = 1e-6
_TILE_BYTES_TARGET = 4 * 1024 * 1024   # amortizes ~0.35 us per-grid-step overhead


def _round_up(x, m):
    return ((x + m - 1) // m) * m


def _vmem_config():
    """Generation-aware (pipeline_budget, vmem_limit, multi_core) in bytes."""
    phys = 128 * 1024 * 1024
    try:
        info = pltpu.get_tpu_info()
        phys = int(getattr(info, "vmem_capacity_bytes", phys) or phys)
    except Exception:
        pass
    if phys <= 100 * 1024 * 1024:
        # v7x-class: 64 MiB VMEM per TensorCore, 2 TensorCores per chip.
        return 20 * 1024 * 1024, 44 * 1024 * 1024, True
    # v5e / v6e: 128 MiB VMEM, 1 TensorCore.
    return 32 * 1024 * 1024, 64 * 1024 * 1024, False


def _pick_tile_rows(rows, feat, itemsize, pipeline_budget, multi_core):
    """Largest sublane-aligned row tile that fits the VMEM byte budget."""
    sub = {4: 8, 2: 16, 1: 32}.get(itemsize, 8)   # sublane packing per dtype
    if rows <= sub:
        return rows                                # one full block (tiny input)
    # Per-row VMEM footprint: double-buffered input + output tiles
    # (2 * 2 * itemsize) plus in-kernel f32 temporaries (~6 live f32 tiles).
    bytes_per_row = (4 * itemsize + 24) * feat
    by_vmem = max(sub, pipeline_budget // bytes_per_row)
    by_target = max(sub, _TILE_BYTES_TARGET // (feat * itemsize))
    tr = min(by_vmem, by_target, _round_up(rows, sub))
    if multi_core and rows >= 4 * sub:
        # v7x: >= 4 balanced steps keeps both TensorCores busy and hides DMA.
        tr = min(tr, _round_up(pl.cdiv(rows, 4), sub))
    return max(sub, (tr // sub) * sub)


def _segment_matrix(feat):
    """(128, 128) block-diagonal ones: seg[i, j] = 1 iff i//feat == j//feat."""
    g = jnp.arange(128) // feat
    return (g[:, None] == g[None, :]).astype(jnp.float32)


def _ln_kernel(x_ref, w_ref, b_ref, o_ref, *, feat):
    # x_ref: (TR, F), w_ref/b_ref: (1, F), o_ref: (TR, F)
    x = x_ref[...].astype(jnp.float32)
    mean = jnp.mean(x, axis=-1, keepdims=True)
    d = x - mean
    inv_nm1 = (1.0 / (feat - 1)) if feat > 1 else float("nan")  # torch.std (N-1)
    var = jnp.sum(d * d, axis=-1, keepdims=True) * inv_nm1
    denom = jnp.sqrt(var) + EPS
    # EUP approx reciprocal + one Newton-Raphson step (VPU has slack here).
    r = pl.reciprocal(denom, approx=True)
    r = r * (2.0 - denom * r)
    y = w_ref[...].astype(jnp.float32) * (d * r) + b_ref[...].astype(jnp.float32)
    o_ref[...] = y.astype(o_ref.dtype)


def _ln_folded_kernel(seg_ref, x_ref, w_ref, b_ref, o_ref, *, feat):
    # Lane-folded path: each 128-lane row holds G = 128/feat independent rows.
    # Segmented lane reductions go through the otherwise-idle MXU:
    #   (x @ seg)[r, j] = sum of x[r, :] over the feat-lane group containing j.
    x = x_ref[...].astype(jnp.float32)
    seg = seg_ref[...]
    ssum = jnp.dot(x, seg, precision=jax.lax.Precision.HIGHEST,
                   preferred_element_type=jnp.float32)
    mean = ssum * (1.0 / feat)
    d = x - mean
    svar = jnp.dot(d * d, seg, precision=jax.lax.Precision.HIGHEST,
                   preferred_element_type=jnp.float32)
    var = svar * (1.0 / (feat - 1))                 # unbiased, matches torch.std
    denom = jnp.sqrt(var) + EPS
    r = pl.reciprocal(denom, approx=True)
    r = r * (2.0 - denom * r)
    y = w_ref[...].astype(jnp.float32) * (d * r) + b_ref[...].astype(jnp.float32)
    o_ref[...] = y.astype(o_ref.dtype)


def layer_norm(x, w, b):
    """x: (..., F); w, b: (F,). Returns same shape/dtype as x."""
    orig_shape = x.shape
    F = orig_shape[-1]
    rows = 1
    for s in orig_shape[:-1]:
        rows *= s

    pipeline_budget, vmem_limit, multi_core = _vmem_config()

    x2 = x.reshape(rows, F)

    # Lane-folding for small feature dims: fold G = 128//F rows into the lane
    # axis so every load/store is an unmasked, lane-dense 128-lane access.
    fold = (F > 1) and (F < 128) and (128 % F == 0) and (rows % (128 // F) == 0)
    if fold:
        G = 128 // F
        feat_k, rows_k = 128, rows // G
        x_k = x2.reshape(rows_k, 128)          # contiguous reshape: no HBM copy
        w_k = jnp.tile(w.reshape(-1), (G,)).reshape(1, 128)
        b_k = jnp.tile(b.reshape(-1), (G,)).reshape(1, 128)
        seg = _segment_matrix(F)
    else:
        feat_k, rows_k = F, rows
        x_k = x2
        w_k = w.reshape(1, F)
        b_k = b.reshape(1, F)

    itemsize = jnp.dtype(x.dtype).itemsize
    tile_rows = _pick_tile_rows(rows_k, feat_k, itemsize, pipeline_budget, multi_core)
    # Partial last block handled by Pallas: no pad/slice HBM round-trip.
    grid = (pl.cdiv(rows_k, tile_rows),)

    common = dict(
        out_shape=jax.ShapeDtypeStruct((rows_k, feat_k), x.dtype),
        compiler_params=pltpu.CompilerParams(
            dimension_semantics=("parallel",),
            vmem_limit_bytes=vmem_limit,
        ),
    )

    if fold:
        out = pl.pallas_call(
            functools.partial(_ln_folded_kernel, feat=F),
            grid_spec=pltpu.PrefetchScalarGridSpec(
                num_scalar_prefetch=0,
                grid=grid,
                in_specs=[
                    pl.BlockSpec((128, 128), lambda i: (0, 0)),        # seg matrix
                    pl.BlockSpec((tile_rows, 128), lambda i: (i, 0)),  # x
                    pl.BlockSpec((1, 128), lambda i: (0, 0)),          # w
                    pl.BlockSpec((1, 128), lambda i: (0, 0)),          # b
                ],
                out_specs=pl.BlockSpec((tile_rows, 128), lambda i: (i, 0)),
            ),
            **common,
        )(seg, x_k, w_k, b_k)
    else:
        out = pl.pallas_call(
            functools.partial(_ln_kernel, feat=F),
            grid_spec=pltpu.PrefetchScalarGridSpec(
                num_scalar_prefetch=0,
                grid=grid,
                in_specs=[
                    pl.BlockSpec((tile_rows, F), lambda i: (i, 0)),
                    pl.BlockSpec((1, F), lambda i: (0, 0)),
                    pl.BlockSpec((1, F), lambda i: (0, 0)),
                ],
                out_specs=pl.BlockSpec((tile_rows, F), lambda i: (i, 0)),
            ),
            **common,
        )(x_k, w_k, b_k)

    return out.reshape(orig_shape)


def _reference(x, w, b):
    xf = x.astype(jnp.float32)
    mean = jnp.mean(xf, axis=-1, keepdims=True)
    std = jnp.std(xf, axis=-1, keepdims=True, ddof=1)   # unbiased, like torch.std
    return (w * ((xf - mean) / (std + EPS)) + b).astype(x.dtype)


if __name__ == "__main__":
    key = jax.random.PRNGKey(0)

    # shapes implied by the module: batch=2, seq=8, hidden(features)=32
    B, S, F = 2, 8, 32
    x = jax.random.normal(key, (B, S, F), dtype=jnp.float32)
    w = jnp.ones((F,), dtype=jnp.float32)   # nn.Parameter(torch.ones(features))
    b = jnp.zeros((F,), dtype=jnp.float32)  # nn.Parameter(torch.zeros(features))

    y = layer_norm(x, w, b)
    jax.block_until_ready(y)
    assert jnp.allclose(y, _reference(x, w, b), atol=2e-4, rtol=2e-4), \
        "mismatch (lane-folded path)"

    # non-foldable row count + partial last block (cdiv path, no padding)
    x_odd = jax.random.normal(jax.random.PRNGKey(1), (3, 7, F), dtype=jnp.float32)
    y_odd = layer_norm(x_odd, w, b)
    jax.block_until_ready(y_odd)
    assert jnp.allclose(y_odd, _reference(x_odd, w, b), atol=2e-4, rtol=2e-4), \
        "mismatch (partial-block path)"

    # wide, already lane-dense feature dim (plain path, F % 128 == 0)
    F2 = 256
    x_wide = jax.random.normal(jax.random.PRNGKey(2), (2, 8, F2), dtype=jnp.float32)
    w2 = jnp.ones((F2,), dtype=jnp.float32)
    b2 = jnp.zeros((F2,), dtype=jnp.float32)
    y_wide = layer_norm(x_wide, w2, b2)
    jax.block_until_ready(y_wide)
    assert jnp.allclose(y_wide, _reference(x_wide, w2, b2), atol=2e-4, rtol=2e-4), \
        "mismatch (wide path)"

    print("KERNEL_OK")
</pallas_src>

<mosaic_0001>
module attributes {stable_mosaic.version = 11 : i64} {
  func.func @_ln_folded_kernel(%arg0: i32, %arg1: memref<128x128xf32, #tpu.memory_space<vmem>>, %arg2: memref<4x128xf32, #tpu.memory_space<vmem>>, %arg3: memref<1x128xf32, #tpu.memory_space<vmem>>, %arg4: memref<1x128xf32, #tpu.memory_space<vmem>>, %arg5: memref<4x128xf32, #tpu.memory_space<vmem>>) attributes {dimension_semantics = [#tpu.dimension_semantics<parallel>], iteration_bounds = array<i64: 1>, scalar_prefetch = 0 : i64, scratch_operands = 0 : i64, tpu.core_type = #tpu.core_type<tc>, window_params = [{pipeline_mode = #tpu.pipeline_mode<synchronous>, transform_indices = @transform_0, window_bounds = array<i64: 128, 128>}, {transform_indices = @transform_1, window_bounds = array<i64: 4, 128>}, {pipeline_mode = #tpu.pipeline_mode<synchronous>, transform_indices = @transform_2, window_bounds = array<i64: 1, 128>}, {pipeline_mode = #tpu.pipeline_mode<synchronous>, transform_indices = @transform_3, window_bounds = array<i64: 1, 128>}, {transform_indices = @transform_4, window_bounds = array<i64: 4, 128>}]} {
    %c0 = arith.constant 0 : index
    %c0_0 = arith.constant 0 : index
    %0 = vector.load %arg2[%c0, %c0_0] : memref<4x128xf32, #tpu.memory_space<vmem>>, vector<4x128xf32>
    %c0_1 = arith.constant 0 : index
    %c0_2 = arith.constant 0 : index
    %1 = vector.load %arg1[%c0_1, %c0_2] : memref<128x128xf32, #tpu.memory_space<vmem>>, vector<128x128xf32>
    %cst = arith.constant dense<0.000000e+00> : vector<4x128xf32>
    %2 = tpu.matmul %0, %1, %cst {dimension_numbers = #tpu.dot_dimension_numbers<[1], [0], [0], [1], [0, 0, 1, 1], [], []>, precision = #tpu.contract_precision<fp32>} : vector<4x128xf32>, vector<128x128xf32>, vector<4x128xf32> -> vector<4x128xf32>
    %cst_3 = arith.constant 3.125000e-02 : f32
    %3 = vector.broadcast %cst_3 : f32 to vector<4x128xf32>
    %4 = arith.mulf %2, %3 : vector<4x128xf32>
    %5 = arith.subf %0, %4 : vector<4x128xf32>
    %6 = arith.mulf %5, %5 : vector<4x128xf32>
    %cst_4 = arith.constant dense<0.000000e+00> : vector<4x128xf32>
    %7 = tpu.matmul %6, %1, %cst_4 {dimension_numbers = #tpu.dot_dimension_numbers<[1], [0], [0], [1], [0, 0, 1, 1], [], []>, precision = #tpu.contract_precision<fp32>} : vector<4x128xf32>, vector<128x128xf32>, vector<4x128xf32> -> vector<4x128xf32>
    %cst_5 = arith.constant 0.0322580636 : f32
    %8 = vector.broadcast %cst_5 : f32 to vector<4x128xf32>
    %9 = arith.mulf %7, %8 : vector<4x128xf32>
    %10 = math.sqrt %9 : vector<4x128xf32>
    %cst_6 = arith.constant 9.99999997E-7 : f32
    %11 = vector.broadcast %cst_6 : f32 to vector<4x128xf32>
    %12 = arith.addf %10, %11 : vector<4x128xf32>
    %13 = tpu.reciprocal %12 {approx = true} : vector<4x128xf32> -> vector<4x128xf32>
    %14 = arith.mulf %12, %13 : vector<4x128xf32>
    %cst_7 = arith.constant 2.000000e+00 : f32
    %15 = vector.broadcast %cst_7 : f32 to vector<4x128xf32>
    %16 = arith.subf %15, %14 : vector<4x128xf32>
    %17 = arith.mulf %13, %16 : vector<4x128xf32>
    %c0_8 = arith.constant 0 : index
    %c0_9 = arith.constant 0 : index
    %18 = vector.load %arg3[%c0_8, %c0_9] : memref<1x128xf32, #tpu.memory_space<vmem>>, vector<1x128xf32>
    %19 = arith.mulf %5, %17 : vector<4x128xf32>
    %20 = vector.broadcast %18 : vector<1x128xf32> to vector<4x128xf32>
    %21 = arith.mulf %20, %19 : vector<4x128xf32>
    %c0_10 = arith.constant 0 : index
    %c0_11 = arith.constant 0 : index
    %22 = vector.load %arg4[%c0_10, %c0_11] : memref<1x128xf32, #tpu.memory_space<vmem>>, vector<1x128xf32>
    %23 = vector.broadcast %22 : vector<1x128xf32> to vector<4x128xf32>
    %24 = arith.addf %21, %23 : vector<4x128xf32>
    %c0_12 = arith.constant 0 : index
    %c0_13 = arith.constant 0 : index
    %25 = vector.load %arg5[%c0_12, %c0_13] : memref<4x128xf32, #tpu.memory_space<vmem>>, vector<4x128xf32>
    tpu.vector_store %arg5[%c0_12, %c0_13], %24 {strides = array<i32>} : memref<4x128xf32, #tpu.memory_space<vmem>>, vector<4x128xf32>,
    return
  }
  func.func @transform_0(%arg0: i32) -> (i32, i32) {
    %c0_i32 = arith.constant 0 : i32
    %c0_i32_0 = arith.constant 0 : i32
    %c0_i32_1 = arith.constant 0 : i32
    return %c0_i32, %c0_i32_0 : i32, i32
  }
  func.func @transform_1(%arg0: i32) -> (i32, i32) {
    %c0_i32 = arith.constant 0 : i32
    %c0_i32_0 = arith.constant 0 : i32
    return %arg0, %c0_i32 : i32, i32
  }
  func.func @transform_2(%arg0: i32) -> (i32, i32) {
    %c0_i32 = arith.constant 0 : i32
    %c0_i32_0 = arith.constant 0 : i32
    %c0_i32_1 = arith.constant 0 : i32
    return %c0_i32, %c0_i32_0 : i32, i32
  }
  func.func @transform_3(%arg0: i32) -> (i32, i32) {
    %c0_i32 = arith.constant 0 : i32
    %c0_i32_0 = arith.constant 0 : i32
    %c0_i32_1 = arith.constant 0 : i32
    return %c0_i32, %c0_i32_0 : i32, i32
  }
  func.func @transform_4(%arg0: i32) -> (i32, i32) {
    %c0_i32 = arith.constant 0 : i32
    %c0_i32_0 = arith.constant 0 : i32
    return %arg0, %c0_i32 : i32, i32
  }
}

</mosaic_0001>

<bundles_post_ra>
// kernel: tpu_custom_call.1
= control target key start
LH: loop header
LB: loop body
LE: loop exit
PB: predicated region body
PF: predicated region fallthrough
CT: control target
= control target key end

     0   :  { %9 = vsyncpa [#allocation3], 0  ;;  %s2779_s0 = inlined_call_operand.hbm [shape: f32[128,128], index: 0, kind: input, shape index: {}]   ;;  %s2780_s1 = inlined_call_operand.hbm [shape: f32[4,128], index: 1, kind: input, shape index: {}]   ;;  %s2781_s2 = inlined_call_operand.vmem [shape: f32[1,128], index: 2, kind: input, shape index: {}]   ;;  %s2782_s3 = inlined_call_operand.vmem [shape: f32[1,128], index: 3, kind: input, shape index: {}]   ;;  %s2783_s4 = inlined_call_operand.hbm [shape: f32[4,128], index: 4, kind: output, shape index: {}]  }
   0x1   :  { %10 = vsyncpa [#allocation6], 0 }
   0x2   :  { %11 = vsyncpa [#allocation4], 0  ;;  %s2096_s15 = smov [#allocation2]  }
   0x3   :  { %s17_s16 = sshll.u32 %s2096_s15, 4  ;;  %s18_s16 = int_to_ptr.vmem [resolvable:$true] %s17_s16 }
   0x4   :  { %s2038_s17 = scalar_lea.vmem %s18_s16, 2048  ;;  %p2043_p1 = scmp.lt.s32.totalorder %s18_s16, %s18_s16 }
   0x5   :  { %p2039_p0 = scmp.ne.s32.totalorder %s18_s16, %s2038_s17  ;;  %p2044_p2 = scmp.lt.s32.totalorder %s2038_s17, %s2038_s17 }
   0x7   :  { %p2045_p3 = por %p2044_p2, %p2043_p1 }
   0x9   :  { %p2046_p4 = pnand %p2045_p3, %p2039_p0 }
   0xb   :  { %2049 = shalt.err (!%p2046_p4)
}
   0xc   :  { %s2097_s18 = smov 128   ;;  %s2098_s19 = smov 8  }
   0xd   :  { %23 = dma.hbm_to_vmem [thread:$0]  %s2779_s0, 2048, %s18_s16, [#allocation3], %s2097_s18, %s2097_s18, %s2098_s19  }
   0xe   :  { %s2099_s22 = smov [#allocation5]  }
   0xf   :  { %s30_s23 = sshll.u32 %s2099_s22, 4  ;;  %s31_s23 = int_to_ptr.vmem [resolvable:$true] %s30_s23 }
  0x10   :  { %s2058_s24 = scalar_lea.vmem %s31_s23, 64  ;;  %p2063_p6 = scmp.lt.s32.totalorder %s31_s23, %s31_s23 }
  0x11   :  { %p2059_p5 = scmp.ne.s32.totalorder %s31_s23, %s2058_s24  ;;  %p2064_p7 = scmp.lt.s32.totalorder %s2058_s24, %s2058_s24 }
  0x13   :  { %p2065_p8 = por %p2064_p7, %p2063_p6 }
  0x15   :  { %p2066_p9 = pnand %p2065_p8, %p2059_p5 }
  0x17   :  { %2069 = shalt.err (!%p2066_p9)
}
  0x18   :  { %33 = dma.hbm_to_vmem [thread:$0]  %s2780_s1, 64, %s31_s23, [#allocation6]  }
  0x19   :  { %2090 = dma.done.wait [#allocation3], 2048  }
  0x1a   :  { %2091 = vsyncadd [#allocation3], 4294965248 }
  0x1b   :  { %2092 = dma.done.wait [#allocation6], 64  }
  0x1c   :  { %2093 = vsyncadd [#allocation6], 4294967232  ;;  %v2796_v0 = vmov 0.0   ;;  %vm2101_vm0 = vmmov 0   ;;  %v60_v1 = vld [vmem:[#allocation2 + $0x78] sm:$0xff]  ;;  %v59_v2 = vld [vmem:[#allocation2 + $0x70] sm:$0xff] }
  0x1d   :  { %1599 = vmatprep.subr.mxu0 %v2796_v0  ;;  %1634 = vmatprep.subr.mxu1 %v2796_v0  ;;  %v58_v3 = vld [vmem:[#allocation2 + $0x68] sm:$0xff]  ;;  %v2140_v4 = vand.u32 4294901760, %v60_v1  ;;  %v2142_v5 = vand.u32 4294901760, %v59_v2  ;;  %v57_v7 = vld [vmem:[#allocation2 + $0x60] sm:$0xff]  ;;  %v56_v8 = vld [vmem:[#allocation2 + $0x58] sm:$0xff]  ;;  %s2102_s29 = smov [#allocation7]  }
  0x1e   :  { %1631 = vmatprep.mubr.msk.f32.mxu0 %vm2101_vm0, %v2796_v0  ;;  %1666 = vmatprep.mubr.msk.f32.mxu1 %vm2101_vm0, %v2796_v0  ;;  %v2144_v6 = vand.u32 4294901760, %v58_v3  ;;  %v55_v9 = vld [vmem:[#allocation2 + $0x50] sm:$0xff]  ;;  %v2146_v10 = vand.u32 4294901760, %v57_v7  ;;  %v2148_v11 = vand.u32 4294901760, %v56_v8  ;;  %v54_v13 = vld [vmem:[#allocation2 + $0x48] sm:$0xff]  ;;  %v53_v14 = vld [vmem:[#allocation2 + $0x40] sm:$0xff] }
  0x1f   :  { %v2150_v12 = vand.u32 4294901760, %v55_v9  ;;  %1600 = vmatpush3.msra.mxu0 %v2140_v4  ;;  %v2154_v15 = vsub.f32 %v60_v1, %v2140_v4  ;;  %v2157_v16 = vsub.f32 %v59_v2, %v2142_v5  ;;  %v2159_v17 = vand.u32 4294901760, %v54_v13  ;;  %v52_v19 = vld [vmem:[#allocation2 + $0x38] sm:$0xff]  ;;  %v51_v26 = vld [vmem:[#allocation2 + $0x30] sm:$0xff]  ;;  %v50_v36 = vld [vmem:[#allocation2 + $0x28] sm:$0xff]  ;;  %s1383_s30 = sshll.u32 %s2102_s29, 4  ;;  %s1384_s30 = int_to_ptr.vmem [resolvable:$true] %s1383_s30 }
  0x20   :  { %v2162_v18 = vsub.f32 %v58_v3, %v2144_v6  ;;  %1601 = vmatprep.subr.mxu0 %v2796_v0  ;;  %v2166_v20 = vsub.f32 %v57_v7, %v2146_v10  ;;  %v2169_v21 = vsub.f32 %v56_v8, %v2148_v11  ;;  %v2181_v25 = vand.u32 4294901760, %v53_v14  ;;  %v49_v41 = vld [vmem:[#allocation2 + $0x20] sm:$0xff]  ;;  %v48_v49 = vld [vmem:[#allocation2 + $0x18] sm:$0xff]  ;;  %v47_v54 = vld [vmem:[#allocation2 + $0x10] sm:$0xff]  ;;  %s2070_s5 = scalar_lea.vmem %s1384_s30, 64  ;;  %p2075_p11 = scmp.lt.s32.totalorder %s1384_s30, %s1384_s30 }
  0x21   :  { %1602 = vmatpush3.msra.mxu0 %v2142_v5  ;;  %v2173_v22 = vand.u32 4294901760, %v2154_v15  ;;  %v2176_v23 = vand.u32 4294901760, %v2157_v16  ;;  %v2187_v28 = vand.u32 4294901760, %v52_v19  ;;  %v2193_v30 = vsub.f32 %v55_v9, %v2150_v12  ;;  %v2240_v50 = vld [vmem:[#allocation5] sm:$0xf]  ;;  %v46_v60 = vld [vmem:[#allocation2 + $0x8] sm:$0xff]  ;;  %p2071_p10 = scmp.ne.s32.totalorder %s1384_s30, %s2070_s5  ;;  %p2076_p12 = scmp.lt.s32.totalorder %s2070_s5, %s2070_s5 }
  0x22   :  { %v2179_v24 = vand.u32 4294901760, %v2162_v18  ;;  %1603 = vmatprep.subr.mxu0 %v2796_v0  ;;  %v2185_v27 = vand.u32 4294901760, %v2166_v20  ;;  %v2190_v29 = vand.u32 4294901760, %v2169_v21  ;;  %v2203_v34 = vsub.f32 %v54_v13, %v2159_v17  ;;  %2798 = vst [vmem:[#allocation11_spill] sm:$0xff] %v2240_v50  ;;  %v45_v7 = vld [vmem:[#allocation2] sm:$0xff] }
  0x23   :  { %1604 = vmatpush3.msra.mxu0 %v2144_v6  ;;  %v156_v31 = vsub.f32 %v2154_v15, %v2173_v22  ;;  %v163_v32 = vsub.f32 %v2157_v16, %v2176_v23  ;;  %v2206_v35 = vand.u32 4294901760, %v51_v26  ;;  %v2216_v40 = vand.u32 4294901760, %v2193_v30  ;;  %p2077_p13 = por %p2076_p12, %p2075_p11 }
  0x24   :  { %v170_v33 = vsub.f32 %v2162_v18, %v2179_v24  ;;  %1605 = vmatprep.subr.mxu0 %v2796_v0  ;;  %v177_v39 = vsub.f32 %v2166_v20, %v2185_v27  ;;  %v184_v42 = vsub.f32 %v2169_v21, %v2190_v29  ;;  %v2222_v43 = vsub.f32 %v53_v14, %v2181_v25 }
  0x25   :  { %1606 = vmatpush3.msra.mxu0 %v2146_v10  ;;  %v2209_v37 = vand.u32 4294901760, %v156_v31  ;;  %v2211_v38 = vand.u32 4294901760, %v163_v32  ;;  %v2228_v45 = vand.u32 4294901760, %v50_v36  ;;  %v2231_v46 = vand.u32 4294901760, %v2203_v34  ;;  %p2078_p0 = pnand %p2077_p13, %p2071_p10 }
  0x26   :  { %1607 = vmatprep.subr.mxu0 %v2796_v0  ;;  %v2226_v44 = vand.u32 4294901760, %v170_v33  ;;  %v2234_v47 = vsub.f32 %v52_v19, %v2187_v28  ;;  %v2238_v48 = vand.u32 4294901760, %v49_v41  ;;  %v2244_v51 = vand.u32 4294901760, %v177_v39 }
  0x27   :  { %1608 = vmatpush3.msra.mxu0 %v2148_v11  ;;  %1635 = vmatpush3.msra.mxu1 %v2209_v37  ;;  %v191_v52 = vsub.f32 %v2193_v30, %v2216_v40  ;;  %v2249_v53 = vand.u32 4294901760, %v2222_v43  ;;  %v2252_v55 = vsub.f32 %v51_v26, %v2206_v35  ;;  %v2256_v56 = vand.u32 4294901760, %v184_v42 }
  0x28   :  { %1609 = vmatprep.subr.mxu0 %v2796_v0  ;;  %1636 = vmatprep.subr.mxu1 %v2796_v0  ;;  %2799 = vst [vmem:[#allocation12_spill] sm:$0xff] %v2244_v51  ;;  %v2259_v57 = vand.u32 4294901760, %v2234_v47  ;;  %v198_v58 = vsub.f32 %v2203_v34, %v2231_v46  ;;  %v2265_v59 = vand.u32 4294901760, %v48_v49  ;;  %v2268_v61 = vsub.f32 %v50_v36, %v2228_v45 }
  0x29   :  { %1610 = vmatpush3.msra.mxu0 %v2150_v12  ;;  %1637 = vmatpush3.msra.mxu1 %v2211_v38  ;;  %2800 = vst [vmem:[#allocation13_spill] sm:$0xff] %v2256_v56  ;;  %v2271_v62 = vand.u32 4294901760, %v2240_v50  ;;  %v2275_v63 = vand.u32 4294901760, %v47_v54  ;;  %v2279_v1 = vand.u32 4294901760, %v191_v52  ;;  %v205_v2 = vsub.f32 %v2222_v43, %v2249_v53 }
  0x2a   :  { %1611 = vmatprep.subr.mxu0 %v2796_v0  ;;  %1638 = vmatprep.subr.mxu1 %v2796_v0  ;;  %v2284_v3 = vand.u32 4294901760, %v2252_v55  ;;  %v2287_v8 = vsub.f32 %v49_v41, %v2238_v48  ;;  %v212_v9 = vsub.f32 %v2234_v47, %v2259_v57  ;;  %v2293_v13 = vand.u32 4294901760, %v46_v60 }
  0x2b   :  { %1612 = vmatpush3.msra.mxu0 %v2159_v17  ;;  %1639 = vmatpush3.msra.mxu1 %v2226_v44  ;;  %2801 = vst [vmem:[#allocation14_spill] sm:$0xff] %v2279_v1  ;;  %v2297_v14 = vand.u32 4294901760, %v198_v58  ;;  %v2300_v19 = vand.u32 4294901760, %v2268_v61  ;;  %v2304_v26 = vsub.f32 %v2240_v50, %v2271_v62  ;;  %v2307_v31 = vsub.f32 %v48_v49, %v2265_v59 }
  0x2c   :  { %1613 = vmatprep.subr.mxu0 %v2796_v0  ;;  %1640 = vmatprep.subr.mxu1 %v2796_v0  ;;  %v2311_v32 = vand.u32 4294901760, %v45_v7  ;;  %v2315_v33 = vand.u32 4294901760, %v205_v2  ;;  %v219_v36 = vsub.f32 %v2252_v55, %v2284_v3  ;;  %v2320_v39 = vand.u32 4294901760, %v2287_v8 }
  0x2d   :  { %1614 = vmatpush3.msra.mxu0 %v2181_v25  ;;  %1641 = vmatpush3.msra.mxu1 %v2244_v51  ;;  %2802 = vst [vmem:[#allocation15_spill] sm:$0xff] %v2297_v14  ;;  %v2323_v41 = vsub.f32 %v47_v54, %v2275_v63  ;;  %v2327_v42 = vand.u32 4294901760, %v212_v9  ;;  %v226_v49 = vsub.f32 %v2268_v61, %v2300_v19  ;;  %v2335_v58 = vand.u32 4294901760, %v2307_v31 }
  0x2e   :  { %1615 = vmatprep.subr.mxu0 %v2796_v0  ;;  %1642 = vmatprep.subr.mxu1 %v2796_v0  ;;  %2803 = vst [vmem:[#allocation16_spill] sm:$0xff] %v2315_v33  ;;  %v2338_v54 = vsub.f32 %v46_v60, %v2293_v13  ;;  %v2344_v2 = vand.u32 4294901760, %v219_v36  ;;  %v233_v9 = vsub.f32 %v2287_v8, %v2320_v39  ;;  %v2808_v36 = vand.u32 4294901760, %v2304_v26 }
  0x2f   :  { %1616 = vmatpush3.msra.mxu0 %v2187_v28  ;;  %1643 = vmatpush3.msra.mxu1 %v2256_v56  ;;  %2804 = vst [vmem:[#allocation17_spill] sm:$0xff] %v2327_v42  ;;  %2805 = vst [vmem:[#allocation18_spill] sm:$0xff] %v2335_v58  ;;  %v2349_v52 = vand.u32 4294901760, %v2323_v41  ;;  %v2352_v50 = vsub.f32 %v45_v7, %v2311_v32  ;;  %v2358_v60 = vand.u32 4294901760, %v226_v49 }
  0x30   :  { %1617 = vmatprep.subr.mxu0 %v2796_v0  ;;  %1644 = vmatprep.subr.mxu1 %v2796_v0  ;;  %2806 = vst [vmem:[#allocation19_spill] sm:$0xff] %v2344_v2  ;;  %v2366_v7 = vand.u32 4294901760, %v2338_v54  ;;  %v2372_v49 = vand.u32 4294901760, %v233_v9 }
  0x31   :  { %1618 = vmatpush3.msra.mxu0 %v2206_v35  ;;  %1645 = vmatpush3.msra.mxu1 %v2279_v1  ;;  %2807 = vst [vmem:[#allocation20_spill] sm:$0xff] %v2349_v52 }
  0x32   :  { %1619 = vmatprep.subr.mxu0 %v2796_v0  ;;  %1646 = vmatprep.subr.mxu1 %v2796_v0  ;;  %2809 = vst [vmem:[#allocation21_spill] sm:$0xff] %v2366_v7  ;;  %v254_v9 = vsub.f32 %v2338_v54, %v2366_v7 }
  0x33   :  { %1620 = vmatpush3.msra.mxu0 %v2228_v45  ;;  %1647 = vmatpush3.msra.mxu1 %v2297_v14  ;;  %v240_v14 = vsub.f32 %v2307_v31, %v2335_v58 }
  0x34   :  { %1621 = vmatprep.subr.mxu0 %v2796_v0  ;;  %1648 = vmatprep.subr.mxu1 %v2796_v0 }
  0x35   :  { %1622 = vmatpush3.msra.mxu0 %v2238_v48  ;;  %1649 = vmatpush3.msra.mxu1 %v2315_v33  ;;  %v145_v33 = vsub.f32 %v2304_v26, %v2808_v36  ;;  %v2377_v36 = vand.u32 4294901760, %v2352_v50  ;;  %v2383_v56 = vand.u32 4294901760, %v240_v14  ;;  %v2398_v14 = vand.u32 4294901760, %v254_v9 }
  0x36   :  { %1623 = vmatprep.subr.mxu0 %v2796_v0  ;;  %1650 = vmatprep.subr.mxu1 %v2796_v0 }
  0x37   :  { %1624 = vmatpush3.msra.mxu0 %v2265_v59  ;;  %1651 = vmatpush3.msra.mxu1 %v2327_v42  ;;  %v247_v42 = vsub.f32 %v2323_v41, %v2349_v52  ;;  %2810 = vst [vmem:[#allocation22_spill] sm:$0xff] %v2377_v36  ;;  %v146_v1 = vand.u32 4294901760, %v145_v33  ;;  %v261_v51 = vsub.f32 %v2352_v50, %v2377_v36 }
  0x38   :  { %1625 = vmatprep.subr.mxu0 %v2796_v0  ;;  %1652 = vmatprep.subr.mxu1 %v2796_v0 }
  0x39   :  { %1626 = vmatpush3.msra.mxu0 %v2275_v63  ;;  %1653 = vmatpush3.msra.mxu1 %v2344_v2  ;;  %v2391_v2 = vand.u32 4294901760, %v247_v42  ;;  %v2404_v33 = vand.u32 4294901760, %v261_v51  ;;  %v2811_v51 = vand.u32 4294901760, %v2304_v26  ;;  %v2818_v42 = vld [vmem:[#allocation19_spill] sm:$0xff] }
  0x3a   :  { %1627 = vmatprep.subr.mxu0 %v2796_v0  ;;  %1654 = vmatprep.subr.mxu1 %v2796_v0 }
  0x3b   :  { %1628 = vmatpush3.msra.mxu0 %v2293_v13  ;;  %1655 = vmatpush3.msra.mxu1 %v2358_v60 }
  0x3c   :  { %1629 = vmatprep.subr.mxu0 %v2796_v0  ;;  %1656 = vmatprep.subr.mxu1 %v2796_v0 }
  0x3d   :  { %1630 = vmatpush3.msra.mxu0 %v2311_v32  ;;  %1657 = vmatpush3.msra.mxu1 %v2372_v49 }
  0x3e   :  { %1658 = vmatprep.subr.mxu1 %v2796_v0  ;;  %1669 = vmatprep.subr.mxu0 %v2796_v0 }
  0x3f   :  { %1632 = vmatmul.mubr.f32.vlgmr.msra.gmra.mxu0 %v146_v1  ;;  %1659 = vmatpush3.msra.mxu1 %v2383_v56  ;;  %v2816_v1 = vld [vmem:[#allocation16_spill] sm:$0xff] }
  0x40   :  { %1670 = vmatpush3.msra.mxu0 %v2154_v15  ;;  %1660 = vmatprep.subr.mxu1 %v2796_v0 }
  0x41   :  { %1671 = vmatprep.subr.mxu0 %v2796_v0  ;;  %1661 = vmatpush3.msra.mxu1 %v2391_v2 }
  0x42   :  { %1672 = vmatpush3.msra.mxu0 %v2157_v16  ;;  %1662 = vmatprep.subr.mxu1 %v2796_v0 }
  0x43   :  { %1673 = vmatprep.subr.mxu0 %v2796_v0  ;;  %1663 = vmatpush3.msra.mxu1 %v2398_v14 }
  0x44   :  { %1674 = vmatpush3.msra.mxu0 %v2162_v18  ;;  %1664 = vmatprep.subr.mxu1 %v2796_v0 }
  0x45   :  { %1675 = vmatprep.subr.mxu0 %v2796_v0  ;;  %1665 = vmatpush3.msra.mxu1 %v2404_v33 }
  0x46   :  { %1676 = vmatpush3.msra.mxu0 %v2166_v20  ;;  %1667 = vmatmul.mubr.f32.vlgmr.msra.gmra.mxu1 %v2271_v62 }
  0x47   :  { %1677 = vmatprep.subr.mxu0 %v2796_v0  ;;  %1704 = vmatprep.subr.mxu1 %v2796_v0 }
  0x48   :  { %1678 = vmatpush3.msra.mxu0 %v2169_v21  ;;  %1705 = vmatpush3.msra.mxu1 %v2140_v4 }
  0x49   :  { %1679 = vmatprep.subr.mxu0 %v2796_v0  ;;  %1706 = vmatprep.subr.mxu1 %v2796_v0 }
  0x4a   :  { %1680 = vmatpush3.msra.mxu0 %v2193_v30  ;;  %1707 = vmatpush3.msra.mxu1 %v2142_v5 }
  0x4b   :  { %1681 = vmatprep.subr.mxu0 %v2796_v0  ;;  %1708 = vmatprep.subr.mxu1 %v2796_v0 }
  0x4c   :  { %1682 = vmatpush3.msra.mxu0 %v2203_v34  ;;  %1709 = vmatpush3.msra.mxu1 %v2144_v6 }
  0x4d   :  { %1683 = vmatprep.subr.mxu0 %v2796_v0  ;;  %1710 = vmatprep.subr.mxu1 %v2796_v0 }
  0x4e   :  { %1684 = vmatpush3.msra.mxu0 %v2222_v43  ;;  %1711 = vmatpush3.msra.mxu1 %v2146_v10 }
  0x4f   :  { %1685 = vmatprep.subr.mxu0 %v2796_v0  ;;  %1712 = vmatprep.subr.mxu1 %v2796_v0 }
  0x50   :  { %1686 = vmatpush3.msra.mxu0 %v2234_v47  ;;  %1713 = vmatpush3.msra.mxu1 %v2148_v11 }
  0x51   :  { %1687 = vmatprep.subr.mxu0 %v2796_v0  ;;  %1714 = vmatprep.subr.mxu1 %v2796_v0 }
  0x52   :  { %1688 = vmatpush3.msra.mxu0 %v2252_v55  ;;  %1715 = vmatpush3.msra.mxu1 %v2150_v12 }
  0x53   :  { %1689 = vmatprep.subr.mxu0 %v2796_v0  ;;  %1716 = vmatprep.subr.mxu1 %v2796_v0 }
  0x54   :  { %1690 = vmatpush3.msra.mxu0 %v2268_v61  ;;  %1717 = vmatpush3.msra.mxu1 %v2159_v17 }
  0x55   :  { %1691 = vmatprep.subr.mxu0 %v2796_v0  ;;  %1718 = vmatprep.subr.mxu1 %v2796_v0 }
  0x56   :  { %1692 = vmatpush3.msra.mxu0 %v2287_v8  ;;  %1719 = vmatpush3.msra.mxu1 %v2181_v25 }
  0x57   :  { %1693 = vmatprep.subr.mxu0 %v2796_v0  ;;  %1720 = vmatprep.subr.mxu1 %v2796_v0 }
  0x58   :  { %1694 = vmatpush3.msra.mxu0 %v2307_v31  ;;  %1721 = vmatpush3.msra.mxu1 %v2187_v28 }
  0x59   :  { %1695 = vmatprep.subr.mxu0 %v2796_v0  ;;  %1722 = vmatprep.subr.mxu1 %v2796_v0 }
  0x5a   :  { %1696 = vmatpush3.msra.mxu0 %v2323_v41  ;;  %1723 = vmatpush3.msra.mxu1 %v2206_v35 }
  0x5b   :  { %1697 = vmatprep.subr.mxu0 %v2796_v0  ;;  %1724 = vmatprep.subr.mxu1 %v2796_v0 }
  0x5c   :  { %1698 = vmatpush3.msra.mxu0 %v2338_v54  ;;  %1725 = vmatpush3.msra.mxu1 %v2228_v45 }
  0x5d   :  { %1699 = vmatprep.subr.mxu0 %v2796_v0  ;;  %1726 = vmatprep.subr.mxu1 %v2796_v0 }
  0x5e   :  { %1700 = vmatpush3.msra.mxu0 %v2352_v50  ;;  %1701 = vmatprep.mubr.msk.f32.mxu0 %vm2101_vm0, %v2796_v0 }
  0x5f   :  { %1727 = vmatpush3.msra.mxu1 %v2238_v48  ;;  %1702 = vmatmul.mubr.f32.vlgmr.msra.gmra.mxu0 %v2304_v26  ;;  %v2817_v26 = vld [vmem:[#allocation17_spill] sm:$0xff] }
  0x60   :  { %1728 = vmatprep.subr.mxu1 %v2796_v0  ;;  %1739 = vmatprep.subr.mxu0 %v2796_v0 }
  0x61   :  { %1729 = vmatpush3.msra.mxu1 %v2265_v59  ;;  %1740 = vmatpush3.msra.mxu0 %v2173_v22 }
  0x62   :  { %1730 = vmatprep.subr.mxu1 %v2796_v0  ;;  %1741 = vmatprep.subr.mxu0 %v2796_v0 }
  0x63   :  { %1731 = vmatpush3.msra.mxu1 %v2275_v63  ;;  %1742 = vmatpush3.msra.mxu0 %v2176_v23 }
  0x64   :  { %1732 = vmatprep.subr.mxu1 %v2796_v0  ;;  %1743 = vmatprep.subr.mxu0 %v2796_v0 }
  0x65   :  { %1733 = vmatpush3.msra.mxu1 %v2293_v13  ;;  %1744 = vmatpush3.msra.mxu0 %v2179_v24 }
  0x66   :  { %1734 = vmatprep.subr.mxu1 %v2796_v0  ;;  %1745 = vmatprep.subr.mxu0 %v2796_v0 }
  0x67   :  { %1735 = vmatpush3.msra.mxu1 %v2311_v32  ;;  %1736 = vmatprep.mubr.msk.f32.mxu1 %vm2101_vm0, %v2796_v0 }
  0x68   :  { %1746 = vmatpush3.msra.mxu0 %v2185_v27  ;;  %1737 = vmatmul.mubr.f32.vlgmr.msra.gmra.mxu1 %v2811_v51 }
  0x69   :  { %1747 = vmatprep.subr.mxu0 %v2796_v0  ;;  %1774 = vmatprep.subr.mxu1 %v2796_v0 }
  0x6a   :  { %1748 = vmatpush3.msra.mxu0 %v2190_v29  ;;  %1775 = vmatpush3.msra.mxu1 %v2140_v4 }
  0x6b   :  { %1749 = vmatprep.subr.mxu0 %v2796_v0  ;;  %1776 = vmatprep.subr.mxu1 %v2796_v0 }
  0x6c   :  { %1750 = vmatpush3.msra.mxu0 %v2216_v40  ;;  %1777 = vmatpush3.msra.mxu1 %v2142_v5 }
  0x6d   :  { %1751 = vmatprep.subr.mxu0 %v2796_v0  ;;  %1778 = vmatprep.subr.mxu1 %v2796_v0 }
  0x6e   :  { %1752 = vmatpush3.msra.mxu0 %v2231_v46  ;;  %1779 = vmatpush3.msra.mxu1 %v2144_v6 }
  0x6f   :  { %1753 = vmatprep.subr.mxu0 %v2796_v0  ;;  %1780 = vmatprep.subr.mxu1 %v2796_v0 }
  0x70   :  { %1754 = vmatpush3.msra.mxu0 %v2249_v53  ;;  %1781 = vmatpush3.msra.mxu1 %v2146_v10 }
  0x71   :  { %1755 = vmatprep.subr.mxu0 %v2796_v0  ;;  %1782 = vmatprep.subr.mxu1 %v2796_v0 }
  0x72   :  { %1756 = vmatpush3.msra.mxu0 %v2259_v57  ;;  %1783 = vmatpush3.msra.mxu1 %v2148_v11 }
  0x73   :  { %1757 = vmatprep.subr.mxu0 %v2796_v0  ;;  %1784 = vmatprep.subr.mxu1 %v2796_v0 }
  0x74   :  { %1758 = vmatpush3.msra.mxu0 %v2284_v3  ;;  %1785 = vmatpush3.msra.mxu1 %v2150_v12 }
  0x75   :  { %1759 = vmatprep.subr.mxu0 %v2796_v0  ;;  %1786 = vmatprep.subr.mxu1 %v2796_v0 }
  0x76   :  { %1760 = vmatpush3.msra.mxu0 %v2300_v19  ;;  %1787 = vmatpush3.msra.mxu1 %v2159_v17 }
  0x77   :  { %1761 = vmatprep.subr.mxu0 %v2796_v0  ;;  %1788 = vmatprep.subr.mxu1 %v2796_v0 }
  0x78   :  { %1762 = vmatpush3.msra.mxu0 %v2320_v39  ;;  %1789 = vmatpush3.msra.mxu1 %v2181_v25 }
  0x79   :  { %1763 = vmatprep.subr.mxu0 %v2796_v0  ;;  %1790 = vmatprep.subr.mxu1 %v2796_v0 }
  0x7a   :  { %1764 = vmatpush3.msra.mxu0 %v2335_v58  ;;  %1791 = vmatpush3.msra.mxu1 %v2187_v28  ;;  %v2819_v58 = vld [vmem:[#allocation11_spill] sm:$0xff] }
  0x7b   :  { %1765 = vmatprep.subr.mxu0 %v2796_v0  ;;  %1792 = vmatprep.subr.mxu1 %v2796_v0 }
  0x7c   :  { %1766 = vmatpush3.msra.mxu0 %v2349_v52  ;;  %1793 = vmatpush3.msra.mxu1 %v2206_v35 }
  0x7d   :  { %1767 = vmatprep.subr.mxu0 %v2796_v0  ;;  %1794 = vmatprep.subr.mxu1 %v2796_v0 }
  0x7e   :  { %1768 = vmatpush3.msra.mxu0 %v2366_v7  ;;  %1795 = vmatpush3.msra.mxu1 %v2228_v45 }
  0x7f   :  { %1769 = vmatprep.subr.mxu0 %v2796_v0  ;;  %1796 = vmatprep.subr.mxu1 %v2796_v0 }
  0x80   :  { %1770 = vmatpush3.msra.mxu0 %v2377_v36  ;;  %1771 = vmatprep.mubr.msk.f32.mxu0 %vm2101_vm0, %v2796_v0 }
  0x81   :  { %1797 = vmatpush3.msra.mxu1 %v2238_v48  ;;  %1772 = vmatmul.mubr.f32.vlgmr.msra.gmra.mxu0 %v2271_v62 }
  0x82   :  { %1798 = vmatprep.subr.mxu1 %v2796_v0  ;;  %1806 = vmatprep.mubr.msk.f32.mxu1 %vm2101_vm0, %v2796_v0 }
  0x83   :  { %1799 = vmatpush3.msra.mxu1 %v2265_v59  ;;  %1809 = vmatprep.subr.mxu0 %v2796_v0 }
  0x84   :  { %1800 = vmatprep.subr.mxu1 %v2796_v0  ;;  %1810 = vmatpush3.msra.mxu0 %v2140_v4 }
  0x85   :  { %1801 = vmatpush3.msra.mxu1 %v2275_v63  ;;  %1811 = vmatprep.subr.mxu0 %v2796_v0 }
  0x86   :  { %1802 = vmatprep.subr.mxu1 %v2796_v0  ;;  %1812 = vmatpush3.msra.mxu0 %v2142_v5 }
  0x87   :  { %1803 = vmatpush3.msra.mxu1 %v2293_v13  ;;  %1813 = vmatprep.subr.mxu0 %v2796_v0 }
  0x88   :  { %1804 = vmatprep.subr.mxu1 %v2796_v0  ;;  %1814 = vmatpush3.msra.mxu0 %v2144_v6 }
  0x89   :  { %1805 = vmatpush3.msra.mxu1 %v2311_v32  ;;  %1815 = vmatprep.subr.mxu0 %v2796_v0 }
  0x8a   :  { %1807 = vmatmul.mubr.f32.vlgmr.msra.gmra.mxu1 %v2271_v62  ;;  %1844 = vmatprep.subr.mxu1 %v2796_v0  ;;  %v2815_v62 = vld [vmem:[#allocation15_spill] sm:$0xff] }
  0x8b   :  { %1845 = vmatpush3.msra.mxu1 %v2209_v37  ;;  %1816 = vmatpush3.msra.mxu0 %v2146_v10  ;;  %v2812_v37 = vld [vmem:[#allocation12_spill] sm:$0xff] }
  0x8c   :  { %1846 = vmatprep.subr.mxu1 %v2796_v0  ;;  %1817 = vmatprep.subr.mxu0 %v2796_v0 }
  0x8d   :  { %1847 = vmatpush3.msra.mxu1 %v2211_v38  ;;  %1818 = vmatpush3.msra.mxu0 %v2148_v11  ;;  %v2813_v38 = vld [vmem:[#allocation13_spill] sm:$0xff] }
  0x8e   :  { %1848 = vmatprep.subr.mxu1 %v2796_v0  ;;  %1819 = vmatprep.subr.mxu0 %v2796_v0 }
  0x8f   :  { %1849 = vmatpush3.msra.mxu1 %v2226_v44  ;;  %1820 = vmatpush3.msra.mxu0 %v2150_v12  ;;  %v2814_v44 = vld [vmem:[#allocation14_spill] sm:$0xff] }
  0x90   :  { %1850 = vmatprep.subr.mxu1 %v2796_v0  ;;  %1821 = vmatprep.subr.mxu0 %v2796_v0 }
  0x91   :  { %1851 = vmatpush3.msra.mxu1 %v2812_v37  ;;  %1822 = vmatpush3.msra.mxu0 %v2159_v17 }
  0x92   :  { %1852 = vmatprep.subr.mxu1 %v2796_v0  ;;  %1823 = vmatprep.subr.mxu0 %v2796_v0 }
  0x93   :  { %1853 = vmatpush3.msra.mxu1 %v2813_v38  ;;  %1824 = vmatpush3.msra.mxu0 %v2181_v25 }
  0x94   :  { %1854 = vmatprep.subr.mxu1 %v2796_v0  ;;  %1825 = vmatprep.subr.mxu0 %v2796_v0 }
  0x95   :  { %1855 = vmatpush3.msra.mxu1 %v2814_v44  ;;  %1826 = vmatpush3.msra.mxu0 %v2187_v28 }
  0x96   :  { %1856 = vmatprep.subr.mxu1 %v2796_v0  ;;  %1827 = vmatprep.subr.mxu0 %v2796_v0 }
  0x97   :  { %1857 = vmatpush3.msra.mxu1 %v2815_v62  ;;  %1828 = vmatpush3.msra.mxu0 %v2206_v35 }
  0x98   :  { %1858 = vmatprep.subr.mxu1 %v2796_v0  ;;  %1829 = vmatprep.subr.mxu0 %v2796_v0 }
  0x99   :  { %1859 = vmatpush3.msra.mxu1 %v2816_v1  ;;  %1830 = vmatpush3.msra.mxu0 %v2228_v45 }
  0x9a   :  { %1860 = vmatprep.subr.mxu1 %v2796_v0  ;;  %1831 = vmatprep.subr.mxu0 %v2796_v0 }
  0x9b   :  { %1861 = vmatpush3.msra.mxu1 %v2817_v26  ;;  %1832 = vmatpush3.msra.mxu0 %v2238_v48 }
  0x9c   :  { %1862 = vmatprep.subr.mxu1 %v2796_v0  ;;  %1833 = vmatprep.subr.mxu0 %v2796_v0 }
  0x9d   :  { %1863 = vmatpush3.msra.mxu1 %v2818_v42  ;;  %1876 = vmatprep.mubr.msk.f32.mxu1 %vm2101_vm0, %v2796_v0 }
  0x9e   :  { %1864 = vmatprep.subr.mxu1 %v2796_v0  ;;  %1834 = vmatpush3.msra.mxu0 %v2265_v59 }
  0x9f   :  { %1865 = vmatpush3.msra.mxu1 %v2358_v60  ;;  %1835 = vmatprep.subr.mxu0 %v2796_v0 }
  0xa0   :  { %1866 = vmatprep.subr.mxu1 %v2796_v0  ;;  %1836 = vmatpush3.msra.mxu0 %v2275_v63 }
  0xa1   :  { %1867 = vmatpush3.msra.mxu1 %v2372_v49  ;;  %1837 = vmatprep.subr.mxu0 %v2796_v0 }
  0xa2   :  { %1868 = vmatprep.subr.mxu1 %v2796_v0  ;;  %1838 = vmatpush3.msra.mxu0 %v2293_v13 }
  0xa3   :  { %1869 = vmatpush3.msra.mxu1 %v2383_v56  ;;  %1839 = vmatprep.subr.mxu0 %v2796_v0 }
  0xa4   :  { %1870 = vmatprep.subr.mxu1 %v2796_v0  ;;  %1840 = vmatpush3.msra.mxu0 %v2311_v32 }
  0xa5   :  { %1871 = vmatpush3.msra.mxu1 %v2391_v2  ;;  %1841 = vmatprep.mubr.msk.f32.mxu0 %vm2101_vm0, %v2796_v0 }
  0xa6   :  { %1872 = vmatprep.subr.mxu1 %v2796_v0  ;;  %1879 = vmatprep.subr.mxu0 %v2796_v0 }
  0xa7   :  { %1873 = vmatpush3.msra.mxu1 %v2398_v14 }
  0xa8   :  { %1874 = vmatprep.subr.mxu1 %v2796_v0 }
  0xa9   :  { %1875 = vmatpush3.msra.mxu1 %v2404_v33 }
  0xaa   :  { %1914 = vmatprep.subr.mxu1 %v2796_v0 }
  0xff   :  { %v148_v56 = vpop.f32.mrf.mxu0 }
 0x101   :  { %v1633_v60 = vpop.f32.mrf.mxu0 }
 0x106   :  { %v299_v49 = vpop.f32.mrf.mxu1 }
 0x107   :  { %v300_v62 = vadd.f32 %v299_v49, %v148_v56  ;;  %v2820_v56 = vmov 0.0  }
 0x108   :  { %v1668_v9 = vpop.f32.mrf.mxu1 }
 0x11f   :  { %v403_v2 = vpop.f32.mrf.mxu0 }
 0x120   :  { %v404_v26 = vadd.f32 %v403_v2, %v300_v62 }
 0x121   :  { %v1703_v51 = vpop.f32.mrf.mxu0 }
 0x128   :  { %v492_v37 = vpop.f32.mrf.mxu1 }
 0x129   :  { %v493_v42 = vadd.f32 %v492_v37, %v404_v26 }
 0x12a   :  { %v1738_v38 = vpop.f32.mrf.mxu1 }
 0x141   :  { %v611_v44 = vpop.f32.mrf.mxu0 }
 0x142   :  { %v612_v14 = vadd.f32 %v611_v44, %v493_v42 }
 0x143   :  { %v1773_v1 = vpop.f32.mrf.mxu0 }
 0x14a   :  { %v698_v36 = vpop.f32.mrf.mxu1 }
 0x14b   :  { %v699_v7 = vadd.f32 %v698_v36, %v612_v14 }
 0x14c   :  { %v1808_v52 = vpop.f32.mrf.mxu1 }
 0x14d   :  { %v702_v33 = vmul.f32 0.03125, %v699_v7 }
 0x14f   :  { %v2620_v0 = vsub.f32 %v2819_v58, %v702_v33 }
 0x151   :  { %v704_v60 = vmul.f32 %v2620_v0, %v2620_v0 }
 0x153   :  { %v2624_v9 = vand.u32 4294901760, %v704_v60 }
 0x155   :  { %v2627_v51 = vsub.f32 %v704_v60, %v2624_v9  ;;  %1877 = vmatmul.mubr.f32.vlgmr.msra.gmra.mxu1 %v2624_v9 }
 0x156   :  { %1915 = vmatpush3.msra.mxu1 %v2140_v4  ;;  %1946 = vmatprep.mubr.msk.f32.mxu1 %vm2101_vm0, %v2820_v56 }
 0x157   :  { %1916 = vmatprep.subr.mxu1 %v2820_v56  ;;  %v788_v52 = vand.u32 4294901760, %v2627_v51 }
 0x158   :  { %1917 = vmatpush3.msra.mxu1 %v2142_v5 }
 0x159   :  { %1918 = vmatprep.subr.mxu1 %v2820_v56  ;;  %v789_v58 = vsub.f32 %v2627_v51, %v788_v52 }
 0x15a   :  { %1919 = vmatpush3.msra.mxu1 %v2144_v6 }
 0x15b   :  { %1920 = vmatprep.subr.mxu1 %v2820_v56  ;;  %v790_v7 = vand.u32 4294901760, %v789_v58 }
 0x15c   :  { %1921 = vmatpush3.msra.mxu1 %v2146_v10 }
 0x15d   :  { %1922 = vmatprep.subr.mxu1 %v2820_v56  ;;  %1842 = vmatmul.mubr.f32.vlgmr.msra.gmra.mxu0 %v790_v7 }
 0x15e   :  { %1880 = vmatpush3.msra.mxu0 %v2154_v15  ;;  %1923 = vmatpush3.msra.mxu1 %v2148_v11 }
 0x15f   :  { %1881 = vmatprep.subr.mxu0 %v2820_v56  ;;  %1924 = vmatprep.subr.mxu1 %v2820_v56 }
 0x160   :  { %1882 = vmatpush3.msra.mxu0 %v2157_v16  ;;  %1925 = vmatpush3.msra.mxu1 %v2150_v12 }
 0x161   :  { %1883 = vmatprep.subr.mxu0 %v2820_v56  ;;  %1926 = vmatprep.subr.mxu1 %v2820_v56 }
 0x162   :  { %1884 = vmatpush3.msra.mxu0 %v2162_v18  ;;  %1927 = vmatpush3.msra.mxu1 %v2159_v17 }
 0x163   :  { %1885 = vmatprep.subr.mxu0 %v2820_v56  ;;  %1928 = vmatprep.subr.mxu1 %v2820_v56 }
 0x164   :  { %1886 = vmatpush3.msra.mxu0 %v2166_v20  ;;  %1929 = vmatpush3.msra.mxu1 %v2181_v25 }
 0x165   :  { %1887 = vmatprep.subr.mxu0 %v2820_v56  ;;  %1930 = vmatprep.subr.mxu1 %v2820_v56 }
 0x166   :  { %1888 = vmatpush3.msra.mxu0 %v2169_v21  ;;  %1931 = vmatpush3.msra.mxu1 %v2187_v28 }
 0x167   :  { %1889 = vmatprep.subr.mxu0 %v2820_v56  ;;  %1932 = vmatprep.subr.mxu1 %v2820_v56 }
 0x168   :  { %1890 = vmatpush3.msra.mxu0 %v2193_v30  ;;  %1933 = vmatpush3.msra.mxu1 %v2206_v35 }
 0x169   :  { %1891 = vmatprep.subr.mxu0 %v2820_v56  ;;  %1934 = vmatprep.subr.mxu1 %v2820_v56 }
 0x16a   :  { %1892 = vmatpush3.msra.mxu0 %v2203_v34  ;;  %1935 = vmatpush3.msra.mxu1 %v2228_v45 }
 0x16b   :  { %1893 = vmatprep.subr.mxu0 %v2820_v56  ;;  %1936 = vmatprep.subr.mxu1 %v2820_v56 }
 0x16c   :  { %1894 = vmatpush3.msra.mxu0 %v2222_v43  ;;  %1937 = vmatpush3.msra.mxu1 %v2238_v48 }
 0x16d   :  { %1895 = vmatprep.subr.mxu0 %v2820_v56  ;;  %1938 = vmatprep.subr.mxu1 %v2820_v56 }
 0x16e   :  { %1896 = vmatpush3.msra.mxu0 %v2234_v47  ;;  %1939 = vmatpush3.msra.mxu1 %v2265_v59 }
 0x16f   :  { %1897 = vmatprep.subr.mxu0 %v2820_v56  ;;  %1940 = vmatprep.subr.mxu1 %v2820_v56 }
 0x170   :  { %1898 = vmatpush3.msra.mxu0 %v2252_v55  ;;  %1941 = vmatpush3.msra.mxu1 %v2275_v63 }
 0x171   :  { %1899 = vmatprep.subr.mxu0 %v2820_v56  ;;  %1942 = vmatprep.subr.mxu1 %v2820_v56 }
 0x172   :  { %1900 = vmatpush3.msra.mxu0 %v2268_v61  ;;  %1943 = vmatpush3.msra.mxu1 %v2293_v13 }
 0x173   :  { %1901 = vmatprep.subr.mxu0 %v2820_v56  ;;  %1944 = vmatprep.subr.mxu1 %v2820_v56 }
 0x174   :  { %1902 = vmatpush3.msra.mxu0 %v2287_v8  ;;  %1945 = vmatpush3.msra.mxu1 %v2311_v32 }
 0x175   :  { %1903 = vmatprep.subr.mxu0 %v2820_v56  ;;  %1947 = vmatmul.mubr.f32.vlgmr.msra.gmra.mxu1 %v788_v52 }
 0x176   :  { %1984 = vmatprep.subr.mxu1 %v2820_v56  ;;  %1904 = vmatpush3.msra.mxu0 %v2307_v31 }
 0x177   :  { %1985 = vmatpush3.msra.mxu1 %v2140_v4  ;;  %1905 = vmatprep.subr.mxu0 %v2820_v56  ;;  %v2821_v4 = vld [vmem:[#allocation18_spill] sm:$0xff] }
 0x178   :  { %1986 = vmatprep.subr.mxu1 %v2820_v56  ;;  %1906 = vmatpush3.msra.mxu0 %v2323_v41 }
 0x179   :  { %1987 = vmatpush3.msra.mxu1 %v2142_v5  ;;  %1907 = vmatprep.subr.mxu0 %v2820_v56  ;;  %v2822_v5 = vld [vmem:[#allocation20_spill] sm:$0xff] }
 0x17a   :  { %1988 = vmatprep.subr.mxu1 %v2820_v56  ;;  %1908 = vmatpush3.msra.mxu0 %v2338_v54 }
 0x17b   :  { %1989 = vmatpush3.msra.mxu1 %v2144_v6  ;;  %1909 = vmatprep.subr.mxu0 %v2820_v56  ;;  %v2823_v6 = vld [vmem:[#allocation21_spill] sm:$0xff] }
 0x17c   :  { %1990 = vmatprep.subr.mxu1 %v2820_v56  ;;  %1910 = vmatpush3.msra.mxu0 %v2352_v50 }
 0x17d   :  { %1911 = vmatprep.mubr.msk.f32.mxu0 %vm2101_vm0, %v2820_v56  ;;  %1991 = vmatpush3.msra.mxu1 %v2146_v10  ;;  %v2824_v10 = vld [vmem:[#allocation22_spill] sm:$0xff] }
 0x17e   :  { %1912 = vmatmul.mubr.f32.vlgmr.msra.gmra.mxu0 %v2627_v51  ;;  %1949 = vmatprep.subr.mxu0 %v2820_v56 }
 0x17f   :  { %1992 = vmatprep.subr.mxu1 %v2820_v56  ;;  %1950 = vmatpush3.msra.mxu0 %v2173_v22 }
 0x180   :  { %1993 = vmatpush3.msra.mxu1 %v2148_v11  ;;  %1951 = vmatprep.subr.mxu0 %v2820_v56 }
 0x181   :  { %1994 = vmatprep.subr.mxu1 %v2820_v56  ;;  %1952 = vmatpush3.msra.mxu0 %v2176_v23 }
 0x182   :  { %1995 = vmatpush3.msra.mxu1 %v2150_v12  ;;  %1953 = vmatprep.subr.mxu0 %v2820_v56 }
 0x183   :  { %1996 = vmatprep.subr.mxu1 %v2820_v56  ;;  %1954 = vmatpush3.msra.mxu0 %v2179_v24 }
 0x184   :  { %1997 = vmatpush3.msra.mxu1 %v2159_v17  ;;  %1955 = vmatprep.subr.mxu0 %v2820_v56 }
 0x185   :  { %1998 = vmatprep.subr.mxu1 %v2820_v56  ;;  %1956 = vmatpush3.msra.mxu0 %v2185_v27 }
 0x186   :  { %1999 = vmatpush3.msra.mxu1 %v2181_v25  ;;  %1957 = vmatprep.subr.mxu0 %v2820_v56 }
 0x187   :  { %2000 = vmatprep.subr.mxu1 %v2820_v56  ;;  %1958 = vmatpush3.msra.mxu0 %v2190_v29 }
 0x188   :  { %2001 = vmatpush3.msra.mxu1 %v2187_v28  ;;  %1959 = vmatprep.subr.mxu0 %v2820_v56 }
 0x189   :  { %2002 = vmatprep.subr.mxu1 %v2820_v56  ;;  %1960 = vmatpush3.msra.mxu0 %v2216_v40 }
 0x18a   :  { %2003 = vmatpush3.msra.mxu1 %v2206_v35  ;;  %1961 = vmatprep.subr.mxu0 %v2820_v56 }
 0x18b   :  { %2004 = vmatprep.subr.mxu1 %v2820_v56  ;;  %1962 = vmatpush3.msra.mxu0 %v2231_v46 }
 0x18c   :  { %2005 = vmatpush3.msra.mxu1 %v2228_v45  ;;  %1963 = vmatprep.subr.mxu0 %v2820_v56 }
 0x18d   :  { %2006 = vmatprep.subr.mxu1 %v2820_v56  ;;  %1964 = vmatpush3.msra.mxu0 %v2249_v53 }
 0x18e   :  { %2007 = vmatpush3.msra.mxu1 %v2238_v48  ;;  %1965 = vmatprep.subr.mxu0 %v2820_v56 }
 0x18f   :  { %2008 = vmatprep.subr.mxu1 %v2820_v56  ;;  %1966 = vmatpush3.msra.mxu0 %v2259_v57 }
 0x190   :  { %2009 = vmatpush3.msra.mxu1 %v2265_v59  ;;  %1967 = vmatprep.subr.mxu0 %v2820_v56  ;;  %v1393_v59 = vld [vmem:[%s2781_s2] ss:$0 sm:$0xff] }
 0x191   :  { %2010 = vmatprep.subr.mxu1 %v2820_v56  ;;  %1968 = vmatpush3.msra.mxu0 %v2284_v3 }
 0x192   :  { %2011 = vmatpush3.msra.mxu1 %v2275_v63  ;;  %1969 = vmatprep.subr.mxu0 %v2820_v56  ;;  %v1394_v63 = vld [vmem:[%s2782_s3] ss:$0 sm:$0xff] }
 0x193   :  { %2012 = vmatprep.subr.mxu1 %v2820_v56  ;;  %1970 = vmatpush3.msra.mxu0 %v2300_v19 }
 0x194   :  { %2013 = vmatpush3.msra.mxu1 %v2293_v13  ;;  %1971 = vmatprep.subr.mxu0 %v2820_v56 }
 0x195   :  { %2014 = vmatprep.subr.mxu1 %v2820_v56  ;;  %1972 = vmatpush3.msra.mxu0 %v2320_v39 }
 0x196   :  { %2015 = vmatpush3.msra.mxu1 %v2311_v32  ;;  %2016 = vmatprep.mubr.msk.f32.mxu1 %vm2101_vm0, %v2820_v56 }
 0x197   :  { %1973 = vmatprep.subr.mxu0 %v2820_v56  ;;  %2017 = vmatmul.mubr.f32.vlgmr.msra.gmra.mxu1 %v2624_v9 }
 0x198   :  { %1974 = vmatpush3.msra.mxu0 %v2821_v4  ;;  %1981 = vmatprep.mubr.msk.f32.mxu0 %vm2101_vm0, %v2820_v56 }
 0x199   :  { %1975 = vmatprep.subr.mxu0 %v2820_v56 }
 0x19a   :  { %1976 = vmatpush3.msra.mxu0 %v2822_v5 }
 0x19b   :  { %1977 = vmatprep.subr.mxu0 %v2820_v56 }
 0x19c   :  { %1978 = vmatpush3.msra.mxu0 %v2823_v6 }
 0x19d   :  { %1979 = vmatprep.subr.mxu0 %v2820_v56 }
 0x19e   :  { %1980 = vmatpush3.msra.mxu0 %v2824_v10 }
 0x19f   :  { %1982 = vmatmul.mubr.f32.vlgmr.msra.gmra.mxu0 %v2624_v9 }
 0x215   :  { %v943_v11 = vpop.f32.mrf.mxu1 }
 0x217   :  { %v1878_v12 = vpop.f32.mrf.mxu1 }
 0x21d   :  { %v792_v15 = vpop.f32.mrf.mxu0 }
 0x21e   :  { %v944_v23 = vadd.f32 %v943_v11, %v792_v15 }
 0x21f   :  { %v1843_v16 = vpop.f32.mrf.mxu0 }
 0x235   :  { %v1136_v17 = vpop.f32.mrf.mxu1 }
 0x237   :  { %v1948_v18 = vpop.f32.mrf.mxu1 }
 0x23e   :  { %v1047_v20 = vpop.f32.mrf.mxu0 }
 0x23f   :  { %v1048_v25 = vadd.f32 %v1047_v20, %v944_v23 }
 0x240   :  { %v1913_v21 = vpop.f32.mrf.mxu0 }
 0x241   :  { %v1137_v27 = vadd.f32 %v1136_v17, %v1048_v25 }
 0x257   :  { %v1342_v22 = vpop.f32.mrf.mxu1 }
 0x259   :  { %v2018_v24 = vpop.f32.mrf.mxu1 }
 0x25f   :  { %v1255_v28 = vpop.f32.mrf.mxu0 }
 0x260   :  { %v1256_v29 = vadd.f32 %v1255_v28, %v1137_v27 }
 0x261   :  { %v1983_v30 = vpop.f32.mrf.mxu0 }
 0x262   :  { %v1343_v34 = vadd.f32 %v1342_v22, %v1256_v29 }
 0x264   :  { %v1346_v35 = vmul.f32 0.032258064, %v1343_v34 }
 0x266   :  { %2026 = vrsqrt.f32 %v1346_v35  ;;  %vm1349_vm1 = vcmp.eq.f32.partialorder %v1346_v35, inf  ;;  %v1352_v45 = vand.u32 2147483648, %v1346_v35  ;;  %vm1351_vm2 = vcmp.eq.f32.partialorder %v1346_v35, 0.0 }
 0x273   :  { %v2027_v40 = vpop.eup %2026 }
 0x274   :  { %v1348_v43 = vmul.f32 %v2027_v40, %v1346_v35 }
 0x276   :  { %v1350_v46 = vsel %vm1349_vm1, %v1346_v35, %v1348_v43 }
 0x277   :  { %v1353_v47 = vsel %vm1351_vm2, %v1352_v45, %v1350_v46 }
 0x278   :  { %v1354_v48 = vadd.f32 1e-06, %v1353_v47 }
 0x27a   :  { %2028 = vrcp.f32 %v1354_v48 }
 0x287   :  { %v2029_v50 = vpop.eup %2028 }
 0x288   :  { %v1356_v53 = vmul.f32 %v2029_v50, %v1354_v48 }
 0x28a   :  { %v1357_v55 = vsub.f32 2.0, %v1356_v53 }
 0x28c   :  { %v1358_v57 = vmul.f32 %v2029_v50, %v1357_v55 }
 0x28e   :  { %v1360_v61 = vmul.f32 %v1358_v57, %v2620_v0 }
 0x290   :  { %v1367_v3 = vmul.f32 %v1393_v59, %v1360_v61 }
 0x292   :  { %v1375_v8 = vadd.f32 %v1394_v63, %v1367_v3 }
 0x294   :  { %1376 = vst [vmem:[#allocation7] sm:$0xf] %v1375_v8 }
 0x295   :  { %2081 = shalt.err (!%p2078_p0)
}
 0x296   :  { %1386 = dma.vmem_to_hbm [thread:$0]  %s1384_s30, 64, %s2783_s4, [#allocation4]  }
 0x297   :  { %2094 = dma.done.wait [#allocation4], 64  }
 0x298   :  { %2095 = vsyncadd [#allocation4], 4294967232 }
 0x299   :  { %1390 = vsyncpa [#allocation3], 1 }
 0x29a   :  { %1391 = vsyncpa [#allocation6], 1 }
 0x29b   :  { %1392 = vsyncpa [#allocation4], 1 }

</bundles_post_ra>
